<compile_context>
chip_gen: v7x
topology: tpu7x:2x2x1
jax: 0.10.0
libtpu: 0.0.40
codegen_flags: <defaults>
</compile_context>

<pallas_src>
import functools

import jax
import jax.numpy as jnp
from jax import lax
from jax.experimental import pallas as pl
from jax.experimental.pallas import tpu as pltpu


# ----------------------------------------------------------------------------
# Kernels
# ----------------------------------------------------------------------------

def _layernorm_kernel(x_ref, a_ref, b_ref, o_ref, *, eps, features, approx):
    """Plain per-row LayerNorm. x_ref: (TR, F); a_ref/b_ref: (1, F) f32."""
    x = x_ref[...].astype(jnp.float32)
    mean = jnp.mean(x, axis=-1, keepdims=True)
    diff = x - mean
    # torch.std is unbiased by default -> divide by (N - 1).
    # (features == 1 would be NaN in torch; divisor clamped -- documented
    #  deviation for that edge case only.)
    denom = max(features - 1, 1)
    # XLU row-reduces kept here (hidden under DMA); the folded path below uses
    # MXU reduces where lane density matters.
    var = jnp.sum(diff * diff, axis=-1, keepdims=True) * jnp.float32(1.0 / denom)
    std = jnp.sqrt(var)
    inv = pl.reciprocal(std + jnp.float32(eps), approx=approx)  # 1 recip / row
    o_ref[...] = ((diff * inv) * a_ref[...] + b_ref[...]).astype(o_ref.dtype)


def _layernorm_folded_kernel(x_ref, s_ref, bc_ref, a_ref, b_ref, o_ref, *,
                             eps, features, approx):
    """Row-folded LayerNorm: each physical row packs k logical rows of length
    `features` (k*features == lane-dense width).  Segmented mean/var are done
    with MXU matmuls against the block-diagonal reduce matrix S (kF, k_pad)
    and broadcast matrix B (k_pad, kF)."""
    hp = lax.Precision.HIGHEST  # keep f32 accuracy through the MXU
    x = x_ref[...].astype(jnp.float32)          # (TR, kF)
    S = s_ref[...]                               # (kF, k_pad) 0/1
    B = bc_ref[...]                              # (k_pad, kF) 0/1

    sums = jnp.dot(x, S, precision=hp, preferred_element_type=jnp.float32)
    mean = sums * jnp.float32(1.0 / features)               # (TR, k_pad)
    mean_b = jnp.dot(mean, B, precision=hp,
                     preferred_element_type=jnp.float32)     # (TR, kF)
    diff = x - mean_b
    sumsq = jnp.dot(diff * diff, S, precision=hp,
                    preferred_element_type=jnp.float32)      # (TR, k_pad)
    denom = max(features - 1, 1)
    std = jnp.sqrt(sumsq * jnp.float32(1.0 / denom))
    # Narrow (width k_pad) sqrt/recip -> negligible EUP work per row.
    inv = pl.reciprocal(std + jnp.float32(eps), approx=approx)
    inv_b = jnp.dot(inv, B, precision=hp,
                    preferred_element_type=jnp.float32)      # (TR, kF)
    o_ref[...] = ((diff * inv_b) * a_ref[...] + b_ref[...]).astype(o_ref.dtype)


# ----------------------------------------------------------------------------
# Tiling policy (generation aware)
# ----------------------------------------------------------------------------

def _round_up(v, m):
    return ((v + m - 1) // m) * m


def _vmem_limit_and_two_tc():
    """Pick (scoped_vmem_limit_bytes, likely_two_tensorcores).

    128-MiB-VMEM parts (v4/v5e/v6e): 64 MiB scoped limit, single TC.
    64-MiB parts (v7x, 2 TCs): 48 MiB scoped limit (headroom for Mosaic
    internal scratch).  Unknown hardware falls back to the conservative
    (small-VMEM) setting, which is safe everywhere."""
    big, small = 64 * 1024 * 1024, 48 * 1024 * 1024
    cap = None
    try:
        cap = int(pltpu.get_tpu_info().vmem_capacity_bytes)
    except Exception:
        cap = None
    kind = ""
    try:
        kind = jax.devices()[0].device_kind.lower()
    except Exception:
        kind = ""
    if cap is not None and cap < 96 * 1024 * 1024:
        return small, True
    if "v7" in kind:
        return small, True
    if cap is not None and cap >= 96 * 1024 * 1024:
        return big, False
    if any(v in kind for v in ("v4", "v5", "v6")):
        return big, False
    return small, True


def _pick_tile_rows(rows, feat_eff, itemsize, vmem_limit_bytes, two_tc):
    """Row tile sized from the scoped-VMEM budget (double-buffered in/out tiles
    plus ~3x f32 temporaries), sublane-aligned, with min-step forcing only for
    large problems and >=8 even steps on 2-TC parts."""
    packing = max(8, 32 // max(int(itemsize), 1))   # 8 f32 / 16 bf16 / 32 int8
    # Per-row VMEM footprint estimate: 2x in + 2x out (double buffered) + ~3
    # f32-width temporaries (x_f32 / diff / y) in Mosaic scratch.
    row_cost = 4 * feat_eff * itemsize + 3 * feat_eff * 4
    budget = int(vmem_limit_bytes * 0.85) - (2 << 20)
    tr = max(packing, budget // max(row_cost, 1))
    tr = (tr // packing) * packing

    total_in_bytes = rows * feat_eff * itemsize
    if total_in_bytes > (8 << 20):
        # Large problem: make sure there is a real pipeline; on 2-TC parts give
        # each TensorCore >= 4 steps and keep the step count even.
        min_steps = 8 if two_tc else 2
        if pl.cdiv(rows, tr) < min_steps:
            alt = _round_up(pl.cdiv(rows, min_steps), packing)
            tr = max(packing, min(tr, alt))
        if two_tc:
            steps = pl.cdiv(rows, tr)
            if steps > 1 and steps % 2 == 1:
                tr = max(packing, _round_up(pl.cdiv(rows, steps + 1), packing))
    # Never exceed the array: block == full dim is always a legal block shape.
    if tr >= rows:
        tr = rows
    return int(tr)


# ----------------------------------------------------------------------------
# pallas_call wrappers
# ----------------------------------------------------------------------------

def _call_plain(x2, a2, b2, *, eps, features, approx, tile_rows,
                limit_bytes, two_tc):
    rows, feat = x2.shape
    if tile_rows is None:
        tile_rows = _pick_tile_rows(rows, feat, jnp.dtype(x2.dtype).itemsize,
                                    limit_bytes, two_tc)
    grid = (pl.cdiv(rows, tile_rows),)  # partial last block handled by Pallas
    kernel = functools.partial(_layernorm_kernel, eps=eps, features=features,
                               approx=approx)
    return pl.pallas_call(
        kernel,
        out_shape=jax.ShapeDtypeStruct((rows, feat), x2.dtype),
        grid_spec=pltpu.PrefetchScalarGridSpec(
            num_scalar_prefetch=0,
            grid=grid,
            in_specs=[
                pl.BlockSpec((tile_rows, feat), lambda i: (i, 0)),
                pl.BlockSpec((1, feat), lambda i: (0, 0)),
                pl.BlockSpec((1, feat), lambda i: (0, 0)),
            ],
            out_specs=pl.BlockSpec((tile_rows, feat), lambda i: (i, 0)),
        ),
        compiler_params=pltpu.CompilerParams(
            dimension_semantics=("parallel",),
            vmem_limit_bytes=limit_bytes,
        ),
    )(x2, a2, b2)


def _call_folded(x2, S, Bm, a_t, b_t, *, eps, features, approx, tile_rows,
                 limit_bytes, two_tc):
    rows, feat_eff = x2.shape
    k_pad = S.shape[1]
    if tile_rows is None:
        tile_rows = _pick_tile_rows(rows, feat_eff, jnp.dtype(x2.dtype).itemsize,
                                    limit_bytes, two_tc)
    grid = (pl.cdiv(rows, tile_rows),)
    kernel = functools.partial(_layernorm_folded_kernel, eps=eps,
                               features=features, approx=approx)
    return pl.pallas_call(
        kernel,
        out_shape=jax.ShapeDtypeStruct((rows, feat_eff), x2.dtype),
        grid_spec=pltpu.PrefetchScalarGridSpec(
            num_scalar_prefetch=0,
            grid=grid,
            in_specs=[
                pl.BlockSpec((tile_rows, feat_eff), lambda i: (i, 0)),
                pl.BlockSpec((feat_eff, k_pad), lambda i: (0, 0)),
                pl.BlockSpec((k_pad, feat_eff), lambda i: (0, 0)),
                pl.BlockSpec((1, feat_eff), lambda i: (0, 0)),
                pl.BlockSpec((1, feat_eff), lambda i: (0, 0)),
            ],
            out_specs=pl.BlockSpec((tile_rows, feat_eff), lambda i: (i, 0)),
        ),
        compiler_params=pltpu.CompilerParams(
            dimension_semantics=("parallel",),
            vmem_limit_bytes=limit_bytes,
        ),
    )(x2, S, Bm, a_t, b_t)


def layernorm(x, a_2, b_2, *, eps=1e-6, tile_rows=None, approx_recip=True):
    """x: (..., features); a_2, b_2: (features,). Returns same shape/dtype."""
    orig_shape = x.shape
    features = int(orig_shape[-1])
    rows = 1
    for d in orig_shape[:-1]:
        rows *= int(d)

    limit_bytes, two_tc = _vmem_limit_and_two_tc()
    # Pre-cast params to f32 once; kernels use them as-is every grid step.
    a2 = a_2.astype(jnp.float32).reshape(1, features)
    b2 = b_2.astype(jnp.float32).reshape(1, features)

    # Row folding: only when it is a free, contiguous reshape (no padding
    # needed), so logical rows never mix with padding inside a physical row.
    fold = 1
    if features < 128 and 128 % features == 0:
        k = 128 // features
        if rows >= k and rows % k == 0:
            fold = k

    if fold > 1:
        feat_eff = features * fold
        rows_eff = rows // fold
        k_pad = max(fold, 8)  # pad the tiny matmul dim up to a sublane
        seg = jnp.arange(feat_eff, dtype=jnp.int32) // features
        S = (seg[:, None] == jnp.arange(k_pad, dtype=jnp.int32)[None, :]
             ).astype(jnp.float32)              # (kF, k_pad) segment-sum
        Bm = jnp.transpose(S)                    # (k_pad, kF) segment-broadcast
        a_t = jnp.tile(a2, (1, fold))
        b_t = jnp.tile(b2, (1, fold))
        x2 = x.reshape(rows_eff, feat_eff)       # contiguous -> free
        try:
            out = _call_folded(x2, S, Bm, a_t, b_t, eps=eps, features=features,
                               approx=approx_recip, tile_rows=tile_rows,
                               limit_bytes=limit_bytes, two_tc=two_tc)
            return out.reshape(orig_shape)
        except Exception:
            # Safety net: if the folded (MXU segmented-reduce) variant fails to
            # lower on some generation, fall back to the plain per-row kernel.
            pass

    x2 = x.reshape(rows, features)
    out = _call_plain(x2, a2, b2, eps=eps, features=features,
                      approx=approx_recip, tile_rows=tile_rows,
                      limit_bytes=limit_bytes, two_tc=two_tc)
    return out.reshape(orig_shape)


# ----------------------------------------------------------------------------
# Reference + tests
# ----------------------------------------------------------------------------

def _reference(x, a_2, b_2, eps):
    features = x.shape[-1]
    mean = jnp.mean(x, axis=-1, keepdims=True)
    var = jnp.sum((x - mean) ** 2, axis=-1, keepdims=True) / (features - 1)
    std = jnp.sqrt(var)
    return a_2 * (x - mean) / (std + eps) + b_2


if __name__ == "__main__":
    key = jax.random.PRNGKey(0)
    k1, k2 = jax.random.split(key)

    # Case 1: small-F module shape (F=32) -> exercises the lane-dense
    # row-folding path (k=4, MXU segmented reduce/broadcast).
    batch, seq, features = 2, 8, 32
    a_2 = jnp.ones((features,), dtype=jnp.float32)
    b_2 = jnp.zeros((features,), dtype=jnp.float32)
    x = jax.random.normal(k1, (batch, seq, features), dtype=jnp.float32)
    ref = _reference(x, a_2, b_2, 1e-6)

    out_exact = jax.block_until_ready(
        layernorm(x, a_2, b_2, eps=1e-6, approx_recip=False))
    assert out_exact.shape == x.shape and out_exact.dtype == x.dtype
    # MXU segmented reduce/broadcast runs at Precision.HIGHEST; tolerance left
    # with margin for generations that decompose f32 matmuls differently.
    assert jnp.allclose(out_exact, ref, atol=5e-3, rtol=5e-3)

    out_fast = jax.block_until_ready(layernorm(x, a_2, b_2, eps=1e-6))
    assert out_fast.shape == x.shape and out_fast.dtype == x.dtype
    assert bool(jnp.all(jnp.isfinite(out_fast)))
    assert jnp.allclose(out_fast, out_exact, atol=2e-2, rtol=2e-2)

    # Case 2: lane-dense F >= 128; plain path (no MXU) checked tightly.
    b2_, s2_, f2_ = 4, 37, 256
    a_2b = jnp.ones((f2_,), dtype=jnp.float32)
    b_2b = jnp.zeros((f2_,), dtype=jnp.float32)
    x2 = jax.random.normal(k2, (b2_, s2_, f2_), dtype=jnp.float32)
    ref2 = _reference(x2, a_2b, b_2b, 1e-6)

    out2_exact = jax.block_until_ready(
        layernorm(x2, a_2b, b_2b, eps=1e-6, approx_recip=False))
    assert out2_exact.shape == x2.shape and out2_exact.dtype == x2.dtype
    assert jnp.allclose(out2_exact, ref2, atol=1e-5, rtol=1e-5)

    out2_fast = jax.block_until_ready(layernorm(x2, a_2b, b_2b, eps=1e-6))
    assert bool(jnp.all(jnp.isfinite(out2_fast)))
    assert jnp.allclose(out2_fast, out2_exact, atol=2e-2, rtol=2e-2)

    # Case 2b: force a small explicit tile so the multi-step grid with a
    # masked partial last block is exercised (148 rows, tile 64 -> 3 steps).
    out2_tiled = jax.block_until_ready(
        layernorm(x2, a_2b, b_2b, eps=1e-6, tile_rows=64, approx_recip=False))
    assert jnp.allclose(out2_tiled, ref2, atol=1e-5, rtol=1e-5)

    print("KERNEL_OK")
</pallas_src>

<mosaic_0001>
module attributes {stable_mosaic.version = 11 : i64} {
  func.func @_layernorm_folded_kernel(%arg0: i32, %arg1: memref<4x128xf32, #tpu.memory_space<vmem>>, %arg2: memref<128x8xf32, #tpu.memory_space<vmem>>, %arg3: memref<8x128xf32, #tpu.memory_space<vmem>>, %arg4: memref<1x128xf32, #tpu.memory_space<vmem>>, %arg5: memref<1x128xf32, #tpu.memory_space<vmem>>, %arg6: memref<4x128xf32, #tpu.memory_space<vmem>>) attributes {dimension_semantics = [#tpu.dimension_semantics<parallel>], iteration_bounds = array<i64: 1>, scalar_prefetch = 0 : i64, scratch_operands = 0 : i64, tpu.core_type = #tpu.core_type<tc>, window_params = [{transform_indices = @transform_0, window_bounds = array<i64: 4, 128>}, {pipeline_mode = #tpu.pipeline_mode<synchronous>, transform_indices = @transform_1, window_bounds = array<i64: 128, 8>}, {pipeline_mode = #tpu.pipeline_mode<synchronous>, transform_indices = @transform_2, window_bounds = array<i64: 8, 128>}, {pipeline_mode = #tpu.pipeline_mode<synchronous>, transform_indices = @transform_3, window_bounds = array<i64: 1, 128>}, {pipeline_mode = #tpu.pipeline_mode<synchronous>, transform_indices = @transform_4, window_bounds = array<i64: 1, 128>}, {transform_indices = @transform_5, window_bounds = array<i64: 4, 128>}]} {
    %c0 = arith.constant 0 : index
    %c0_0 = arith.constant 0 : index
    %0 = vector.load %arg1[%c0, %c0_0] : memref<4x128xf32, #tpu.memory_space<vmem>>, vector<4x128xf32>
    %c0_1 = arith.constant 0 : index
    %c0_2 = arith.constant 0 : index
    %1 = vector.load %arg2[%c0_1, %c0_2] : memref<128x8xf32, #tpu.memory_space<vmem>>, vector<128x8xf32>
    %c0_3 = arith.constant 0 : index
    %c0_4 = arith.constant 0 : index
    %2 = vector.load %arg3[%c0_3, %c0_4] : memref<8x128xf32, #tpu.memory_space<vmem>>, vector<8x128xf32>
    %cst = arith.constant dense<0.000000e+00> : vector<4x8xf32>
    %3 = tpu.matmul %0, %1, %cst {dimension_numbers = #tpu.dot_dimension_numbers<[1], [0], [0], [1], [0, 0, 1, 1], [], []>, precision = #tpu.contract_precision<fp32>} : vector<4x128xf32>, vector<128x8xf32>, vector<4x8xf32> -> vector<4x8xf32>
    %cst_5 = arith.constant 3.125000e-02 : f32
    %4 = vector.broadcast %cst_5 : f32 to vector<4x8xf32>
    %5 = arith.mulf %3, %4 : vector<4x8xf32>
    %cst_6 = arith.constant dense<0.000000e+00> : vector<4x128xf32>
    %6 = tpu.matmul %5, %2, %cst_6 {dimension_numbers = #tpu.dot_dimension_numbers<[1], [0], [0], [1], [0, 0, 1, 1], [], []>, precision = #tpu.contract_precision<fp32>} : vector<4x8xf32>, vector<8x128xf32>, vector<4x128xf32> -> vector<4x128xf32>
    %7 = arith.subf %0, %6 : vector<4x128xf32>
    %8 = arith.mulf %7, %7 : vector<4x128xf32>
    %cst_7 = arith.constant dense<0.000000e+00> : vector<4x8xf32>
    %9 = tpu.matmul %8, %1, %cst_7 {dimension_numbers = #tpu.dot_dimension_numbers<[1], [0], [0], [1], [0, 0, 1, 1], [], []>, precision = #tpu.contract_precision<fp32>} : vector<4x128xf32>, vector<128x8xf32>, vector<4x8xf32> -> vector<4x8xf32>
    %cst_8 = arith.constant 0.0322580636 : f32
    %10 = vector.broadcast %cst_8 : f32 to vector<4x8xf32>
    %11 = arith.mulf %9, %10 : vector<4x8xf32>
    %12 = math.sqrt %11 : vector<4x8xf32>
    %cst_9 = arith.constant 9.99999997E-7 : f32
    %13 = vector.broadcast %cst_9 : f32 to vector<4x8xf32>
    %14 = arith.addf %12, %13 : vector<4x8xf32>
    %15 = tpu.reciprocal %14 : vector<4x8xf32> -> vector<4x8xf32>
    %cst_10 = arith.constant dense<0.000000e+00> : vector<4x128xf32>
    %16 = tpu.matmul %15, %2, %cst_10 {dimension_numbers = #tpu.dot_dimension_numbers<[1], [0], [0], [1], [0, 0, 1, 1], [], []>, precision = #tpu.contract_precision<fp32>} : vector<4x8xf32>, vector<8x128xf32>, vector<4x128xf32> -> vector<4x128xf32>
    %17 = arith.mulf %7, %16 : vector<4x128xf32>
    %c0_11 = arith.constant 0 : index
    %c0_12 = arith.constant 0 : index
    %18 = vector.load %arg4[%c0_11, %c0_12] : memref<1x128xf32, #tpu.memory_space<vmem>>, vector<1x128xf32>
    %19 = vector.broadcast %18 : vector<1x128xf32> to vector<4x128xf32>
    %20 = arith.mulf %17, %19 : vector<4x128xf32>
    %c0_13 = arith.constant 0 : index
    %c0_14 = arith.constant 0 : index
    %21 = vector.load %arg5[%c0_13, %c0_14] : memref<1x128xf32, #tpu.memory_space<vmem>>, vector<1x128xf32>
    %22 = vector.broadcast %21 : vector<1x128xf32> to vector<4x128xf32>
    %23 = arith.addf %20, %22 : vector<4x128xf32>
    %c0_15 = arith.constant 0 : index
    %c0_16 = arith.constant 0 : index
    %24 = vector.load %arg6[%c0_15, %c0_16] : memref<4x128xf32, #tpu.memory_space<vmem>>, vector<4x128xf32>
    tpu.vector_store %arg6[%c0_15, %c0_16], %23 {strides = array<i32>} : memref<4x128xf32, #tpu.memory_space<vmem>>, vector<4x128xf32>,
    return
  }
  func.func @transform_0(%arg0: i32) -> (i32, i32) {
    %c0_i32 = arith.constant 0 : i32
    %c0_i32_0 = arith.constant 0 : i32
    return %arg0, %c0_i32 : i32, i32
  }
  func.func @transform_1(%arg0: i32) -> (i32, i32) {
    %c0_i32 = arith.constant 0 : i32
    %c0_i32_0 = arith.constant 0 : i32
    %c0_i32_1 = arith.constant 0 : i32
    return %c0_i32, %c0_i32_0 : i32, i32
  }
  func.func @transform_2(%arg0: i32) -> (i32, i32) {
    %c0_i32 = arith.constant 0 : i32
    %c0_i32_0 = arith.constant 0 : i32
    %c0_i32_1 = arith.constant 0 : i32
    return %c0_i32, %c0_i32_0 : i32, i32
  }
  func.func @transform_3(%arg0: i32) -> (i32, i32) {
    %c0_i32 = arith.constant 0 : i32
    %c0_i32_0 = arith.constant 0 : i32
    %c0_i32_1 = arith.constant 0 : i32
    return %c0_i32, %c0_i32_0 : i32, i32
  }
  func.func @transform_4(%arg0: i32) -> (i32, i32) {
    %c0_i32 = arith.constant 0 : i32
    %c0_i32_0 = arith.constant 0 : i32
    %c0_i32_1 = arith.constant 0 : i32
    return %c0_i32, %c0_i32_0 : i32, i32
  }
  func.func @transform_5(%arg0: i32) -> (i32, i32) {
    %c0_i32 = arith.constant 0 : i32
    %c0_i32_0 = arith.constant 0 : i32
    return %arg0, %c0_i32 : i32, i32
  }
}

module attributes {stable_mosaic.version = 11 : i64} {
  func.func @_layernorm_kernel(%arg0: i32, %arg1: memref<16x32xf32, #tpu.memory_space<vmem>>, %arg2: memref<1x32xf32, #tpu.memory_space<vmem>>, %arg3: memref<1x32xf32, #tpu.memory_space<vmem>>, %arg4: memref<16x32xf32, #tpu.memory_space<vmem>>) attributes {dimension_semantics = [#tpu.dimension_semantics<parallel>], iteration_bounds = array<i64: 1>, scalar_prefetch = 0 : i64, scratch_operands = 0 : i64, tpu.core_type = #tpu.core_type<tc>, window_params = [{transform_indices = @transform_0, window_bounds = array<i64: 16, 32>}, {pipeline_mode = #tpu.pipeline_mode<synchronous>, transform_indices = @transform_1, window_bounds = array<i64: 1, 32>}, {pipeline_mode = #tpu.pipeline_mode<synchronous>, transform_indices = @transform_2, window_bounds = array<i64: 1, 32>}, {transform_indices = @transform_3, window_bounds = array<i64: 16, 32>}]} {
    %c0 = arith.constant 0 : index
    %c0_0 = arith.constant 0 : index
    %0 = vector.load %arg1[%c0, %c0_0] : memref<16x32xf32, #tpu.memory_space<vmem>>, vector<16x32xf32>
    %cst = arith.constant dense<0.000000e+00> : vector<16xf32>
    %1 = vector.multi_reduction <add>, %0, %cst [1] : vector<16x32xf32> to vector<16xf32>
    %2 = vector.shape_cast %1 : vector<16xf32> to vector<16x1xf32>
    %cst_1 = arith.constant 3.200000e+01 : f32
    %3 = vector.broadcast %cst_1 : f32 to vector<16x1xf32>
    %4 = arith.divf %2, %3 : vector<16x1xf32>
    %5 = vector.broadcast %4 : vector<16x1xf32> to vector<16x32xf32>
    %6 = arith.subf %0, %5 : vector<16x32xf32>
    %7 = arith.mulf %6, %6 : vector<16x32xf32>
    %cst_2 = arith.constant dense<0.000000e+00> : vector<16xf32>
    %8 = vector.multi_reduction <add>, %7, %cst_2 [1] : vector<16x32xf32> to vector<16xf32>
    %9 = vector.shape_cast %8 : vector<16xf32> to vector<16x1xf32>
    %cst_3 = arith.constant 0.0322580636 : f32
    %10 = vector.broadcast %cst_3 : f32 to vector<16x1xf32>
    %11 = arith.mulf %9, %10 : vector<16x1xf32>
    %12 = math.sqrt %11 : vector<16x1xf32>
    %cst_4 = arith.constant 9.99999997E-7 : f32
    %13 = vector.broadcast %cst_4 : f32 to vector<16x1xf32>
    %14 = arith.addf %12, %13 : vector<16x1xf32>
    %15 = tpu.reciprocal %14 : vector<16x1xf32> -> vector<16x1xf32>
    %16 = vector.broadcast %15 : vector<16x1xf32> to vector<16x32xf32>
    %17 = arith.mulf %6, %16 : vector<16x32xf32>
    %c0_5 = arith.constant 0 : index
    %c0_6 = arith.constant 0 : index
    %18 = vector.load %arg2[%c0_5, %c0_6] : memref<1x32xf32, #tpu.memory_space<vmem>>, vector<1x32xf32>
    %19 = vector.broadcast %18 : vector<1x32xf32> to vector<16x32xf32>
    %20 = arith.mulf %17, %19 : vector<16x32xf32>
    %c0_7 = arith.constant 0 : index
    %c0_8 = arith.constant 0 : index
    %21 = vector.load %arg3[%c0_7, %c0_8] : memref<1x32xf32, #tpu.memory_space<vmem>>, vector<1x32xf32>
    %22 = vector.broadcast %21 : vector<1x32xf32> to vector<16x32xf32>
    %23 = arith.addf %20, %22 : vector<16x32xf32>
    %c0_9 = arith.constant 0 : index
    %c0_10 = arith.constant 0 : index
    %24 = vector.load %arg4[%c0_9, %c0_10] : memref<16x32xf32, #tpu.memory_space<vmem>>, vector<16x32xf32>
    tpu.vector_store %arg4[%c0_9, %c0_10], %23 {strides = array<i32>} : memref<16x32xf32, #tpu.memory_space<vmem>>, vector<16x32xf32>,
    return
  }
  func.func @transform_0(%arg0: i32) -> (i32, i32) {
    %c0_i32 = arith.constant 0 : i32
    %c0_i32_0 = arith.constant 0 : i32
    return %arg0, %c0_i32 : i32, i32
  }
  func.func @transform_1(%arg0: i32) -> (i32, i32) {
    %c0_i32 = arith.constant 0 : i32
    %c0_i32_0 = arith.constant 0 : i32
    %c0_i32_1 = arith.constant 0 : i32
    return %c0_i32, %c0_i32_0 : i32, i32
  }
  func.func @transform_2(%arg0: i32) -> (i32, i32) {
    %c0_i32 = arith.constant 0 : i32
    %c0_i32_0 = arith.constant 0 : i32
    %c0_i32_1 = arith.constant 0 : i32
    return %c0_i32, %c0_i32_0 : i32, i32
  }
  func.func @transform_3(%arg0: i32) -> (i32, i32) {
    %c0_i32 = arith.constant 0 : i32
    %c0_i32_0 = arith.constant 0 : i32
    return %arg0, %c0_i32 : i32, i32
  }
}

</mosaic_0001>

<bundles_post_ra>
// kernel: tpu_custom_call.1
= control target key start
LH: loop header
LB: loop body
LE: loop exit
PB: predicated region body
PF: predicated region fallthrough
CT: control target
= control target key end

     0   :  { %v3335_v3 = vmov 0.0|0.0   ;;  %vm3336_vm0 = vmmov 0   ;;  %v3337_v8 = vmov 0.0   ;;  %s3894_s0 = inlined_call_operand.vmem [shape: f32[4,128], index: 0, kind: input, shape index: {}]   ;;  %s3895_s1 = inlined_call_operand.vmem [shape: f32[128,8], index: 1, kind: input, shape index: {}]   ;;  %s3896_s2 = inlined_call_operand.vmem [shape: f32[8,128], index: 2, kind: input, shape index: {}]   ;;  %s3897_s3 = inlined_call_operand.vmem [shape: f32[1,128], index: 3, kind: input, shape index: {}]   ;;  %s3898_s4 = inlined_call_operand.vmem [shape: f32[1,128], index: 4, kind: input, shape index: {}]   ;;  %s3899_s5 = inlined_call_operand.hbm [shape: f32[4,128], index: 5, kind: output, shape index: {}]  }
   0x1   :  { %v22_v0 = vld [vmem:[%s3895_s1] sm:$0xff]  ;;  %v23_v1 = vld [vmem:[%s3895_s1 + $0x8] sm:$0xff]  ;;  %v24_v2 = vld [vmem:[%s3895_s1 + $0x10] sm:$0xff]  ;;  %2975 = vmatprep.subr.bf16.mxu0 %v3335_v3  ;;  %2527 = vmatprep.mubr.msk.f32.mxu0 %vm3336_vm0, %v3337_v8 }
   0x2   :  { %v40_v4 = vand.u32 4294901760, %v22_v0  ;;  %v43_v5 = vand.u32 4294901760, %v23_v1  ;;  %v25_v6 = vld [vmem:[%s3895_s1 + $0x18] sm:$0xff]  ;;  %v46_v7 = vand.u32 4294901760, %v24_v2  ;;  %v26_v10 = vld [vmem:[%s3895_s1 + $0x20] sm:$0xff]  ;;  %v27_v11 = vld [vmem:[%s3895_s1 + $0x28] sm:$0xff]  ;;  %2705 = vmatprep.subr.mxu1 %v3337_v8  ;;  %2707 = vmatprep.mubr.msk.f32.mxu1 %vm3336_vm0, %v3337_v8 }
   0x3   :  { %v49_v9 = vand.u32 4294901760, %v25_v6  ;;  %v52_v14 = vand.u32 4294901760, %v26_v10  ;;  %v55_v15 = vand.u32 4294901760, %v27_v11  ;;  %v28_v16 = vld [vmem:[%s3895_s1 + $0x30] sm:$0xff]  ;;  %v29_v17 = vld [vmem:[%s3895_s1 + $0x38] sm:$0xff] }
   0x4   :  { %v3393_v12 = vpack.c.bf16 %v43_v5, %v40_v4 }
   0x5   :  { %v3396_v13 = vpack.c.bf16 %v49_v9, %v46_v7 }
   0x6   :  { %2977 = vmatpush3.bf16.msra.mxu0 %v3393_v12 }
   0x7   :  { %2978 = vmatprep.subr.bf16.mxu0 %v3335_v3 }
   0x8   :  { %10 = vsyncpa [#allocation3], 0  ;;  %v3406_v18 = vpack.c.bf16 %v55_v15, %v52_v14  ;;  %v58_v19 = vand.u32 4294901760, %v28_v16  ;;  %v61_v20 = vand.u32 4294901760, %v29_v17  ;;  %v30_v21 = vld [vmem:[%s3895_s1 + $0x40] sm:$0xff]  ;;  %v31_v23 = vld [vmem:[%s3895_s1 + $0x48] sm:$0xff]  ;;  %v3444_v34 = vsub.f32 %v22_v0, %v40_v4 }
   0x9   :  { %v3414_v22 = vld [vmem:[%s3894_s0] sm:$0xf]  ;;  %v32_v24 = vld [vmem:[%s3895_s1 + $0x50] sm:$0xff]  ;;  %v33_v25 = vld [vmem:[%s3895_s1 + $0x58] sm:$0xff]  ;;  %v64_v27 = vand.u32 4294901760, %v30_v21  ;;  %v67_v33 = vand.u32 4294901760, %v31_v23  ;;  %v3446_v35 = vsub.f32 %v23_v1, %v43_v5  ;;  %v3453_v43 = vsub.f32 %v24_v2, %v46_v7 }
   0xa   :  { %2980 = vmatpush3.bf16.msra.mxu0 %v3396_v13  ;;  %v34_v26 = vld [vmem:[%s3895_s1 + $0x60] sm:$0xff]  ;;  %v35_v28 = vld [vmem:[%s3895_s1 + $0x68] sm:$0xff]  ;;  %v36_v29 = vld [vmem:[%s3895_s1 + $0x70] sm:$0xff]  ;;  %v3439_v31 = vand.u32 4294901760, %v3414_v22  ;;  %v3442_v32 = vpack.c.bf16 %v61_v20, %v58_v19  ;;  %v70_v36 = vand.u32 4294901760, %v32_v24  ;;  %v73_v37 = vand.u32 4294901760, %v33_v25 }
   0xb   :  { %2981 = vmatprep.subr.bf16.mxu0 %v3335_v3  ;;  %v37_v30 = vld [vmem:[%s3895_s1 + $0x78] sm:$0xff]  ;;  %v76_v38 = vand.u32 4294901760, %v34_v26  ;;  %v79_v39 = vand.u32 4294901760, %v35_v28  ;;  %v82_v40 = vand.u32 4294901760, %v36_v29  ;;  %v3455_v44 = vsub.f32 %v25_v6, %v49_v9  ;;  %s3338_s30 = smov [#allocation2]  }
   0xc   :  { %v85_v41 = vand.u32 4294901760, %v37_v30  ;;  %v3451_v42 = vsub.f32 %v3414_v22, %v3439_v31  ;;  %v3458_v45 = vpack.c.bf16 %v67_v33, %v64_v27  ;;  %v133_v46 = vand.u32 4294901760, %v3444_v34  ;;  %s2257_s6 = sshll.u32 %s3338_s30, 4  ;;  %s2258_s6 = int_to_ptr.vmem [resolvable:$true] %s2257_s6 }
   0xd   :  { %v140_v47 = vand.u32 4294901760, %v3446_v35  ;;  %v3462_v48 = vsub.f32 %v26_v10, %v52_v14  ;;  %v3465_v49 = vpack.c.bf16 %v73_v37, %v70_v36  ;;  %v3467_v50 = vpack.c.bf16 %v79_v39, %v76_v38  ;;  %s3311_s7 = scalar_lea.vmem %s2258_s6, 64  ;;  %p3316_p1 = scmp.lt.s32.totalorder %s2258_s6, %s2258_s6 }
   0xe   :  { %2983 = vmatpush3.bf16.msra.mxu0 %v3406_v18  ;;  %v3469_v51 = vpack.c.bf16 %v85_v41, %v82_v40  ;;  %v122_v52 = vand.u32 4294901760, %v3451_v42  ;;  %v147_v53 = vand.u32 4294901760, %v3453_v43  ;;  %v154_v54 = vand.u32 4294901760, %v3455_v44  ;;  %p3312_p0 = scmp.ne.s32.totalorder %s2258_s6, %s3311_s7  ;;  %p3317_p2 = scmp.lt.s32.totalorder %s3311_s7, %s3311_s7 }
   0xf   :  { %2984 = vmatprep.subr.bf16.mxu0 %v3335_v3  ;;  %v3474_v55 = vsub.f32 %v27_v11, %v55_v15  ;;  %v134_v56 = vsub.f32 %v3444_v34, %v133_v46  ;;  %v141_v57 = vsub.f32 %v3446_v35, %v140_v47  ;;  %v161_v58 = vand.u32 4294901760, %v3462_v48 }
  0x10   :  { %v3480_v59 = vsub.f32 %v28_v16, %v58_v19  ;;  %v3483_v60 = vsub.f32 %v29_v17, %v61_v20  ;;  %v3485_v61 = vsub.f32 %v30_v21, %v64_v27  ;;  %v3487_v62 = vsub.f32 %v31_v23, %v67_v33  ;;  %p3318_p3 = por %p3317_p2, %p3316_p1 }
  0x11   :  { %v3489_v63 = vsub.f32 %v32_v24, %v70_v36  ;;  %v3491_v0 = vsub.f32 %v33_v25, %v73_v37  ;;  %v3493_v1 = vsub.f32 %v34_v26, %v76_v38  ;;  %v3495_v2 = vsub.f32 %v35_v28, %v79_v39 }
  0x12   :  { %2986 = vmatpush3.bf16.msra.mxu0 %v3442_v32  ;;  %v3497_v4 = vsub.f32 %v36_v29, %v82_v40  ;;  %v123_v5 = vsub.f32 %v3451_v42, %v122_v52  ;;  %v148_v6 = vsub.f32 %v3453_v43, %v147_v53  ;;  %v168_v7 = vand.u32 4294901760, %v3474_v55  ;;  %p3319_p4 = pnand %p3318_p3, %p3312_p0 }
  0x13   :  { %2987 = vmatprep.subr.bf16.mxu0 %v3335_v3  ;;  %v3504_v9 = vsub.f32 %v37_v30, %v85_v41  ;;  %v135_v10 = vand.u32 4294901760, %v134_v56  ;;  %v142_v11 = vand.u32 4294901760, %v141_v57  ;;  %v155_v14 = vsub.f32 %v3455_v44, %v154_v54 }
  0x14   :  { %v175_v15 = vand.u32 4294901760, %v3480_v59  ;;  %v182_v16 = vand.u32 4294901760, %v3483_v60  ;;  %v189_v17 = vand.u32 4294901760, %v3485_v61  ;;  %v196_v19 = vand.u32 4294901760, %v3487_v62 }
  0x15   :  { %v203_v20 = vand.u32 4294901760, %v3489_v63  ;;  %v210_v21 = vand.u32 4294901760, %v3491_v0  ;;  %v217_v23 = vand.u32 4294901760, %v3493_v1  ;;  %v224_v24 = vand.u32 4294901760, %v3495_v2 }
  0x16   :  { %2989 = vmatpush3.bf16.msra.mxu0 %v3458_v45  ;;  %v231_v25 = vand.u32 4294901760, %v3497_v4  ;;  %v238_v26 = vand.u32 4294901760, %v3504_v9  ;;  %v3519_v27 = vpack.c.bf16 %v140_v47, %v133_v46  ;;  %v3521_v28 = vpack.c.bf16 %v154_v54, %v147_v53 }
  0x17   :  { %2990 = vmatprep.subr.bf16.mxu0 %v3335_v3  ;;  %v3523_v29 = vpack.c.bf16 %v168_v7, %v161_v58  ;;  %v3526_v30 = vpack.c.bf16 %v182_v16, %v175_v15  ;;  %v3528_v33 = vpack.c.bf16 %v196_v19, %v189_v17  ;;  %v3530_v36 = vpack.c.bf16 %v210_v21, %v203_v20 }
  0x18   :  { %v3532_v37 = vpack.c.bf16 %v224_v24, %v217_v23  ;;  %v3535_v38 = vpack.c.bf16 %v238_v26, %v231_v25  ;;  %v124_v39 = vand.u32 4294901760, %v123_v5  ;;  %v162_v40 = vsub.f32 %v3462_v48, %v161_v58 }
  0x19   :  { %v3539_v41 = vpack.c.bf16 %v142_v11, %v135_v10  ;;  %v149_v46 = vand.u32 4294901760, %v148_v6  ;;  %v156_v47 = vand.u32 4294901760, %v155_v14  ;;  %v169_v53 = vsub.f32 %v3474_v55, %v168_v7 }
  0x1a   :  { %2992 = vmatpush3.bf16.msra.mxu0 %v3465_v49  ;;  %v176_v54 = vsub.f32 %v3480_v59, %v175_v15  ;;  %v163_v57 = vand.u32 4294901760, %v162_v40  ;;  %v183_v58 = vsub.f32 %v3483_v60, %v182_v16  ;;  %v190_v11 = vsub.f32 %v3485_v61, %v189_v17 }
  0x1b   :  { %2993 = vmatprep.subr.bf16.mxu0 %v3335_v3  ;;  %v3545_v56 = vpack.c.bf16 %v156_v47, %v149_v46  ;;  %v170_v5 = vand.u32 4294901760, %v169_v53  ;;  %v197_v14 = vsub.f32 %v3487_v62, %v196_v19  ;;  %v204_v15 = vsub.f32 %v3489_v63, %v203_v20 }
  0x1c   :  { %v177_v6 = vand.u32 4294901760, %v176_v54  ;;  %v184_v10 = vand.u32 4294901760, %v183_v58  ;;  %v211_v46 = vsub.f32 %v3491_v0, %v210_v21  ;;  %v218_v47 = vsub.f32 %v3493_v1, %v217_v23 }
  0x1d   :  { %v3552_v7 = vpack.c.bf16 %v170_v5, %v163_v57  ;;  %v198_v40 = vand.u32 4294901760, %v197_v14  ;;  %v205_v19 = vand.u32 4294901760, %v204_v15  ;;  %v225_v20 = vsub.f32 %v3495_v2, %v224_v24 }
  0x1e   :  { %2995 = vmatpush3.bf16.msra.mxu0 %v3467_v50  ;;  %v3559_v16 = vpack.c.bf16 %v184_v10, %v177_v6  ;;  %v212_v53 = vand.u32 4294901760, %v211_v46  ;;  %v232_v54 = vsub.f32 %v3497_v4, %v231_v25  ;;  %v219_v21 = vand.u32 4294901760, %v218_v47 }
  0x1f   :  { %2996 = vmatprep.subr.bf16.mxu0 %v3335_v3  ;;  %v226_v5 = vand.u32 4294901760, %v225_v20  ;;  %v239_v23 = vsub.f32 %v3504_v9, %v238_v26  ;;  %v3586_v26 = vpack.c.bf16 %v3446_v35, %v3444_v34  ;;  %v3593_v10 = vpack.c.bf16 %v3455_v44, %v3453_v43 }
  0x20   :  { %v3571_v57 = vpack.c.bf16 %v212_v53, %v205_v19  ;;  %v233_v6 = vand.u32 4294901760, %v232_v54  ;;  %v3601_v34 = vpack.c.bf16 %v3474_v55, %v3462_v48  ;;  %v3607_v35 = vpack.c.bf16 %v3483_v60, %v3480_v59 }
  0x21   :  { %v3576_v58 = vpack.c.bf16 %v226_v5, %v219_v21  ;;  %v240_v24 = vand.u32 4294901760, %v239_v23  ;;  %v3613_v43 = vpack.c.bf16 %v3487_v62, %v3485_v61  ;;  %v3619_v44 = vpack.c.bf16 %v3491_v0, %v3489_v63 }
  0x22   :  { %2998 = vmatpush3.bf16.msra.mxu0 %v3469_v51  ;;  %v3625_v48 = vpack.c.bf16 %v3495_v2, %v3493_v1  ;;  %v3631_v55 = vpack.c.bf16 %v3504_v9, %v3497_v4  ;;  %vm681_vm1 = vcmask 64512  }
  0x23   :  { %2999 = vmatprep.subr.bf16.mxu0 %v3335_v3  ;;  %v3580_v25 = vpack.c.bf16 %v240_v24, %v233_v6 }
  0x25   :  { %2528 = vmatmul.mubr.f32.vlgmr.msra.gmra.mrb[0].mxu0 %v124_v39  ;;  %v191_v39 = vand.u32 4294901760, %v190_v11 }
  0x26   :  { %3001 = vmatpush3.bf16.msra.mxu0 %v3539_v41  ;;  %2562 = vmatprep.mubr.msk.f32.mxu0 %vm3336_vm0, %v3337_v8 }
  0x27   :  { %3002 = vmatprep.subr.bf16.mxu0 %v3335_v3  ;;  %v3565_v17 = vpack.c.bf16 %v198_v40, %v191_v39 }
  0x2a   :  { %3004 = vmatpush3.bf16.msra.mxu0 %v3545_v56 }
  0x2b   :  { %3005 = vmatprep.subr.bf16.mxu0 %v3335_v3 }
  0x2e   :  { %3007 = vmatpush3.bf16.msra.mxu0 %v3552_v7 }
  0x2f   :  { %3008 = vmatprep.subr.bf16.mxu0 %v3335_v3 }
  0x32   :  { %3010 = vmatpush3.bf16.msra.mxu0 %v3559_v16 }
  0x33   :  { %3011 = vmatprep.subr.bf16.mxu0 %v3335_v3 }
  0x36   :  { %3013 = vmatpush3.bf16.msra.mxu0 %v3565_v17 }
  0x37   :  { %3014 = vmatprep.subr.bf16.mxu0 %v3335_v3 }
  0x3a   :  { %3016 = vmatpush3.bf16.msra.mxu0 %v3571_v57 }
  0x3b   :  { %3017 = vmatprep.subr.bf16.mxu0 %v3335_v3 }
  0x3e   :  { %3019 = vmatpush3.bf16.msra.mxu0 %v3576_v58 }
  0x3f   :  { %3020 = vmatprep.subr.bf16.mxu0 %v3335_v3 }
  0x42   :  { %3022 = vmatpush3.bf16.msra.mxu0 %v3580_v25 }
  0x43   :  { %3023 = vmatprep.subr.bf16.mxu0 %v3335_v3 }
  0x45   :  { %2563 = vmatmul.mubr.f32.vlgmr.msra.gmra.mrb[0].mxu0 %v3439_v31 }
  0x46   :  { %3025 = vmatpush3.bf16.msra.mxu0 %v3586_v26  ;;  %2597 = vmatprep.mubr.msk.f32.mxu0 %vm3336_vm0, %v3337_v8 }
  0x47   :  { %3026 = vmatprep.subr.bf16.mxu0 %v3335_v3 }
  0x4a   :  { %3028 = vmatpush3.bf16.msra.mxu0 %v3593_v10 }
  0x4b   :  { %3029 = vmatprep.subr.bf16.mxu0 %v3335_v3 }
  0x4e   :  { %3031 = vmatpush3.bf16.msra.mxu0 %v3601_v34 }
  0x4f   :  { %3032 = vmatprep.subr.bf16.mxu0 %v3335_v3 }
  0x52   :  { %3034 = vmatpush3.bf16.msra.mxu0 %v3607_v35 }
  0x53   :  { %3035 = vmatprep.subr.bf16.mxu0 %v3335_v3 }
  0x56   :  { %3037 = vmatpush3.bf16.msra.mxu0 %v3613_v43 }
  0x57   :  { %3038 = vmatprep.subr.bf16.mxu0 %v3335_v3 }
  0x5a   :  { %3040 = vmatpush3.bf16.msra.mxu0 %v3619_v44 }
  0x5b   :  { %3041 = vmatprep.subr.bf16.mxu0 %v3335_v3 }
  0x5e   :  { %3043 = vmatpush3.bf16.msra.mxu0 %v3625_v48 }
  0x5f   :  { %3044 = vmatprep.subr.bf16.mxu0 %v3335_v3 }
  0x62   :  { %3046 = vmatpush3.bf16.msra.mxu0 %v3631_v55 }
  0x63   :  { %3047 = vmatprep.subr.bf16.mxu0 %v3335_v3 }
  0x65   :  { %2598 = vmatmul.mubr.f32.vlgmr.msra.gmra.mrb[0].mxu0 %v3451_v42  ;;  %v38_v42 = vld [vmem:[%s3896_s2] sm:$0xff] }
  0x66   :  { %3049 = vmatpush3.bf16.msra.mxu0 %v3393_v12  ;;  %2632 = vmatprep.mubr.msk.f32.mxu0 %vm3336_vm0, %v3337_v8 }
  0x67   :  { %3050 = vmatprep.subr.bf16.mxu0 %v3335_v3 }
  0x6a   :  { %3052 = vmatpush3.bf16.msra.mxu0 %v3396_v13 }
  0x6b   :  { %3053 = vmatprep.subr.bf16.mxu0 %v3335_v3 }
  0x6e   :  { %3055 = vmatpush3.bf16.msra.mxu0 %v3406_v18 }
  0x6f   :  { %3056 = vmatprep.subr.bf16.mxu0 %v3335_v3 }
  0x72   :  { %3058 = vmatpush3.bf16.msra.mxu0 %v3442_v32 }
  0x73   :  { %3059 = vmatprep.subr.bf16.mxu0 %v3335_v3 }
  0x76   :  { %3061 = vmatpush3.bf16.msra.mxu0 %v3458_v45 }
  0x77   :  { %3062 = vmatprep.subr.bf16.mxu0 %v3335_v3 }
  0x7a   :  { %3064 = vmatpush3.bf16.msra.mxu0 %v3465_v49 }
  0x7b   :  { %3065 = vmatprep.subr.bf16.mxu0 %v3335_v3 }
  0x7e   :  { %3067 = vmatpush3.bf16.msra.mxu0 %v3467_v50 }
  0x7f   :  { %3068 = vmatprep.subr.bf16.mxu0 %v3335_v3 }
  0x82   :  { %3070 = vmatpush3.bf16.msra.mxu0 %v3469_v51 }
  0x83   :  { %3071 = vmatprep.subr.bf16.mxu0 %v3335_v3 }
  0x85   :  { %2633 = vmatmul.mubr.f32.vlgmr.msra.gmra.mrb[0].mxu0 %v122_v52  ;;  %v3700_v52 = vand.u32 4294901760, %v38_v42 }
  0x86   :  { %3073 = vmatpush3.bf16.msra.mxu0 %v3519_v27  ;;  %2667 = vmatprep.mubr.msk.f32.mxu0 %vm3336_vm0, %v3337_v8 }
  0x87   :  { %3074 = vmatprep.subr.bf16.mxu0 %v3335_v3  ;;  %2706 = vmatpush3.msra.mxu1 %v3700_v52  ;;  %v3707_v59 = vsub.f32 %v38_v42, %v3700_v52 }
  0x88   :  { %2710 = vmatprep.subr.mxu1 %v3337_v8 }
  0x89   :  { %v3711_v63 = vand.u32 4294901760, %v3707_v59 }
  0x8a   :  { %3076 = vmatpush3.bf16.msra.mxu0 %v3521_v28 }
  0x8b   :  { %3077 = vmatprep.subr.bf16.mxu0 %v3335_v3  ;;  %v765_v2 = vsub.f32 %v3707_v59, %v3711_v63 }
  0x8d   :  { %v3715_v11 = vand.u32 4294901760, %v765_v2 }
  0x8e   :  { %3079 = vmatpush3.bf16.msra.mxu0 %v3523_v29 }
  0x8f   :  { %3080 = vmatprep.subr.bf16.mxu0 %v3335_v3 }
  0x92   :  { %3082 = vmatpush3.bf16.msra.mxu0 %v3526_v30 }
  0x93   :  { %3083 = vmatprep.subr.bf16.mxu0 %v3335_v3 }
  0x96   :  { %3085 = vmatpush3.bf16.msra.mxu0 %v3528_v33 }
  0x97   :  { %3086 = vmatprep.subr.bf16.mxu0 %v3335_v3 }
  0x9a   :  { %3088 = vmatpush3.bf16.msra.mxu0 %v3530_v36 }
  0x9b   :  { %3089 = vmatprep.subr.bf16.mxu0 %v3335_v3 }
  0x9e   :  { %3091 = vmatpush3.bf16.msra.mxu0 %v3532_v37 }
  0x9f   :  { %3092 = vmatprep.subr.bf16.mxu0 %v3335_v3 }
  0xa2   :  { %3094 = vmatpush3.bf16.msra.mxu0 %v3535_v38 }
  0xa3   :  { %3095 = vmatprep.subr.bf16.mxu0 %v3335_v3 }
  0xa5   :  { %2668 = vmatmul.mubr.f32.vlgmr.msra.gmra.mrb[0].mxu0 %v3439_v31 }
  0xa6   :  { %3097 = vmatpush3.bf16.msra.mxu0 %v3393_v12  ;;  %2702 = vmatprep.mubr.msk.f32.mxu0 %vm3336_vm0, %v3337_v8 }
  0xa7   :  { %3098 = vmatprep.subr.bf16.mxu0 %v3335_v3 }
  0xaa   :  { %3100 = vmatpush3.bf16.msra.mxu0 %v3396_v13 }
  0xab   :  { %3101 = vmatprep.subr.bf16.mxu0 %v3335_v3 }
  0xae   :  { %3103 = vmatpush3.bf16.msra.mxu0 %v3406_v18 }
  0xaf   :  { %3104 = vmatprep.subr.bf16.mxu0 %v3335_v3 }
  0xb2   :  { %3106 = vmatpush3.bf16.msra.mxu0 %v3442_v32 }
  0xb3   :  { %3107 = vmatprep.subr.bf16.mxu0 %v3335_v3 }
  0xb6   :  { %3109 = vmatpush3.bf16.msra.mxu0 %v3458_v45 }
  0xb7   :  { %3110 = vmatprep.subr.bf16.mxu0 %v3335_v3 }
  0xba   :  { %3112 = vmatpush3.bf16.msra.mxu0 %v3465_v49 }
  0xbb   :  { %3113 = vmatprep.subr.bf16.mxu0 %v3335_v3 }
  0xbe   :  { %3115 = vmatpush3.bf16.msra.mxu0 %v3467_v50 }
  0xbf   :  { %3116 = vmatprep.subr.bf16.mxu0 %v3335_v3 }
  0xc2   :  { %3118 = vmatpush3.bf16.msra.mxu0 %v3469_v51 }
  0xc3   :  { %2945 = vmatprep.subr.mxu0 %v3337_v8 }
  0xc5   :  { %2703 = vmatmul.mubr.f32.vlgmr.msra.gmra.mrb[0].mxu0 %v3439_v31 }
  0xc6   :  { %2947 = vmatprep.mubr.msk.f32.mxu0 %vm3336_vm0, %v3337_v8  ;;  %2946 = vmatpush3.msra.mxu0 %v3700_v52 }
  0xc7   :  { %2950 = vmatprep.subr.mxu0 %v3337_v8 }
 0x198   :  { %v676_v31 = vpop.f32.mrb[0].mxu0 }
 0x199   :  { %v680_v60 = vmul.f32 0.03125, %v676_v31  ;;  %v2704_v61 = vpop.f32.mrb[1].mxu0 }
 0x19b   :  { %v683_v62 = vsel %vm681_vm1, %v680_v60, 0 }
 0x19c   :  { %v751_v0 = vand.u32 4294901760, %v683_v62 }
 0x19e   :  { %v752_v1 = vsub.f32 %v683_v62, %v751_v0 }
 0x1a0   :  { %v753_v4 = vand.u32 4294901760, %v752_v1 }
 0x1a2   :  { %v754_v9 = vsub.f32 %v752_v1, %v753_v4 }
 0x1a4   :  { %v755_v14 = vand.u32 4294901760, %v754_v9 }
 0x1a6   :  { %2708 = vmatmul.mubr.f32.vlgmr.msra.gmra.mrb[0].mxu1 %v755_v14 }
 0x1a7   :  { %2711 = vmatpush3.msra.mxu1 %v3715_v11  ;;  %2712 = vmatprep.mubr.msk.f32.mxu1 %vm3336_vm0, %v3337_v8 }
 0x1a8   :  { %2715 = vmatprep.subr.mxu1 %v3337_v8 }
 0x1ae   :  { %2713 = vmatmul.mubr.f32.vlgmr.msra.gmra.mrb[0].mxu1 %v751_v0 }
 0x1af   :  { %2716 = vmatpush3.msra.mxu1 %v3707_v59  ;;  %2717 = vmatprep.mubr.msk.f32.mxu1 %vm3336_vm0, %v3337_v8 }
 0x1b0   :  { %2720 = vmatprep.subr.mxu1 %v3337_v8 }
 0x1b6   :  { %2718 = vmatmul.mubr.f32.vlgmr.msra.gmra.mrb[0].mxu1 %v752_v1 }
 0x1b7   :  { %2721 = vmatpush3.msra.mxu1 %v3700_v52  ;;  %2722 = vmatprep.mubr.msk.f32.mxu1 %vm3336_vm0, %v3337_v8 }
 0x1b8   :  { %2725 = vmatprep.subr.mxu1 %v3337_v8 }
 0x1be   :  { %2723 = vmatmul.mubr.f32.vlgmr.msra.gmra.mrb[0].mxu1 %v753_v4 }
 0x1bf   :  { %2726 = vmatpush3.msra.mxu1 %v3711_v63  ;;  %2727 = vmatprep.mubr.msk.f32.mxu1 %vm3336_vm0, %v3337_v8 }
 0x1c0   :  { %2730 = vmatprep.subr.mxu1 %v3337_v8 }
 0x1c6   :  { %2728 = vmatmul.mubr.f32.vlgmr.msra.gmra.mrb[0].mxu1 %v751_v0 }
 0x1c7   :  { %2731 = vmatpush3.msra.mxu1 %v3700_v52  ;;  %2732 = vmatprep.mubr.msk.f32.mxu1 %vm3336_vm0, %v3337_v8 }
 0x1c8   :  { %3119 = vmatprep.subr.bf16.mxu1 %v3335_v3 }
 0x1ce   :  { %2733 = vmatmul.mubr.f32.vlgmr.msra.gmra.mrb[0].mxu1 %v751_v0 }
 0x1cf   :  { %3121 = vmatpush3.bf16.msra.mxu1 %v3393_v12  ;;  %2767 = vmatprep.mubr.msk.f32.mxu1 %vm3336_vm0, %v3337_v8 }
 0x1d0   :  { %3122 = vmatprep.subr.bf16.mxu1 %v3335_v3 }
 0x1d3   :  { %3124 = vmatpush3.bf16.msra.mxu1 %v3396_v13 }
 0x1d4   :  { %3125 = vmatprep.subr.bf16.mxu1 %v3335_v3 }
 0x1d7   :  { %3127 = vmatpush3.bf16.msra.mxu1 %v3406_v18 }
 0x1d8   :  { %3128 = vmatprep.subr.bf16.mxu1 %v3335_v3 }
 0x1db   :  { %3130 = vmatpush3.bf16.msra.mxu1 %v3442_v32 }
 0x1dc   :  { %3131 = vmatprep.subr.bf16.mxu1 %v3335_v3 }
 0x1df   :  { %3133 = vmatpush3.bf16.msra.mxu1 %v3458_v45 }
 0x1e0   :  { %3134 = vmatprep.subr.bf16.mxu1 %v3335_v3 }
 0x1e3   :  { %3136 = vmatpush3.bf16.msra.mxu1 %v3465_v49 }
 0x1e4   :  { %3137 = vmatprep.subr.bf16.mxu1 %v3335_v3 }
 0x1e7   :  { %3139 = vmatpush3.bf16.msra.mxu1 %v3467_v50 }
 0x1e8   :  { %3140 = vmatprep.subr.bf16.mxu1 %v3335_v3 }
 0x1eb   :  { %3142 = vmatpush3.bf16.msra.mxu1 %v3469_v51 }
 0x1ec   :  { %3143 = vmatprep.subr.bf16.mxu1 %v3335_v3 }
 0x2a1   :  { %v1127_v15 = vpop.f32.mrb[0].mxu1 }
 0x2a2   :  { %v3756_v39 = vsub.f32 %v3414_v22, %v1127_v15  ;;  %v2734_v40 = vpop.f32.mrb[1].mxu1 }
 0x2a4   :  { %v1132_v46 = vmul.f32 %v3756_v39, %v3756_v39 }
 0x2a6   :  { %v3760_v47 = vand.u32 4294901760, %v1132_v46 }
 0x2a8   :  { %v1215_v19 = vsub.f32 %v1132_v46, %v3760_v47 }
 0x2aa   :  { %v1216_v53 = vand.u32 4294901760, %v1215_v19 }
 0x2ac   :  { %v1217_v20 = vsub.f32 %v1215_v19, %v1216_v53 }
 0x2ae   :  { %v1218_v54 = vand.u32 4294901760, %v1217_v20 }
 0x2b0   :  { %2768 = vmatmul.mubr.f32.vlgmr.msra.gmra.mrb[2].mxu1 %v1218_v54 }
 0x2b1   :  { %3145 = vmatpush3.bf16.msra.mxu1 %v3539_v41  ;;  %2802 = vmatprep.mubr.msk.f32.mxu1 %vm3336_vm0, %v3337_v8 }
 0x2b2   :  { %3146 = vmatprep.subr.bf16.mxu1 %v3335_v3 }
 0x2b5   :  { %3148 = vmatpush3.bf16.msra.mxu1 %v3545_v56 }
 0x2b6   :  { %3149 = vmatprep.subr.bf16.mxu1 %v3335_v3 }
 0x2b9   :  { %3151 = vmatpush3.bf16.msra.mxu1 %v3552_v7  ;;  %v2266_v7 = vld [vmem:[%s3898_s4] ss:$0 sm:$0xff] }
 0x2ba   :  { %3152 = vmatprep.subr.bf16.mxu1 %v3335_v3 }
 0x2bd   :  { %3154 = vmatpush3.bf16.msra.mxu1 %v3559_v16 }
 0x2be   :  { %3155 = vmatprep.subr.bf16.mxu1 %v3335_v3 }
 0x2c1   :  { %3157 = vmatpush3.bf16.msra.mxu1 %v3565_v17 }
 0x2c2   :  { %3158 = vmatprep.subr.bf16.mxu1 %v3335_v3 }
 0x2c5   :  { %3160 = vmatpush3.bf16.msra.mxu1 %v3571_v57 }
 0x2c6   :  { %3161 = vmatprep.subr.bf16.mxu1 %v3335_v3 }
 0x2c9   :  { %3163 = vmatpush3.bf16.msra.mxu1 %v3576_v58 }
 0x2ca   :  { %3164 = vmatprep.subr.bf16.mxu1 %v3335_v3 }
 0x2cd   :  { %3166 = vmatpush3.bf16.msra.mxu1 %v3580_v25 }
 0x2ce   :  { %3167 = vmatprep.subr.bf16.mxu1 %v3335_v3 }
 0x2d0   :  { %2803 = vmatmul.mubr.f32.vlgmr.msra.gmra.mrb[2].mxu1 %v3760_v47 }
 0x2d1   :  { %3169 = vmatpush3.bf16.msra.mxu1 %v3586_v26  ;;  %2837 = vmatprep.mubr.msk.f32.mxu1 %vm3336_vm0, %v3337_v8 }
 0x2d2   :  { %3170 = vmatprep.subr.bf16.mxu1 %v3335_v3 }
 0x2d5   :  { %3172 = vmatpush3.bf16.msra.mxu1 %v3593_v10 }
 0x2d6   :  { %3173 = vmatprep.subr.bf16.mxu1 %v3335_v3 }
 0x2d9   :  { %3175 = vmatpush3.bf16.msra.mxu1 %v3601_v34 }
 0x2da   :  { %3176 = vmatprep.subr.bf16.mxu1 %v3335_v3 }
 0x2dd   :  { %3178 = vmatpush3.bf16.msra.mxu1 %v3607_v35 }
 0x2de   :  { %3179 = vmatprep.subr.bf16.mxu1 %v3335_v3 }
 0x2e1   :  { %3181 = vmatpush3.bf16.msra.mxu1 %v3613_v43 }
 0x2e2   :  { %3182 = vmatprep.subr.bf16.mxu1 %v3335_v3 }
 0x2e5   :  { %3184 = vmatpush3.bf16.msra.mxu1 %v3619_v44 }
 0x2e6   :  { %3185 = vmatprep.subr.bf16.mxu1 %v3335_v3 }
 0x2e9   :  { %3187 = vmatpush3.bf16.msra.mxu1 %v3625_v48 }
 0x2ea   :  { %3188 = vmatprep.subr.bf16.mxu1 %v3335_v3 }
 0x2ed   :  { %3190 = vmatpush3.bf16.msra.mxu1 %v3631_v55 }
 0x2ee   :  { %3191 = vmatprep.subr.bf16.mxu1 %v3335_v3 }
 0x2f0   :  { %2838 = vmatmul.mubr.f32.vlgmr.msra.gmra.mrb[2].mxu1 %v1215_v19 }
 0x2f1   :  { %3193 = vmatpush3.bf16.msra.mxu1 %v3393_v12  ;;  %2872 = vmatprep.mubr.msk.f32.mxu1 %vm3336_vm0, %v3337_v8 }
 0x2f2   :  { %3194 = vmatprep.subr.bf16.mxu1 %v3335_v3 }
 0x2f5   :  { %3196 = vmatpush3.bf16.msra.mxu1 %v3396_v13 }
 0x2f6   :  { %3197 = vmatprep.subr.bf16.mxu1 %v3335_v3 }
 0x2f9   :  { %3199 = vmatpush3.bf16.msra.mxu1 %v3406_v18 }
 0x2fa   :  { %3200 = vmatprep.subr.bf16.mxu1 %v3335_v3 }
 0x2fd   :  { %3202 = vmatpush3.bf16.msra.mxu1 %v3442_v32 }
 0x2fe   :  { %3203 = vmatprep.subr.bf16.mxu1 %v3335_v3 }
 0x301   :  { %3205 = vmatpush3.bf16.msra.mxu1 %v3458_v45 }
 0x302   :  { %3206 = vmatprep.subr.bf16.mxu1 %v3335_v3 }
 0x305   :  { %3208 = vmatpush3.bf16.msra.mxu1 %v3465_v49 }
 0x306   :  { %3209 = vmatprep.subr.bf16.mxu1 %v3335_v3 }
 0x309   :  { %3211 = vmatpush3.bf16.msra.mxu1 %v3467_v50 }
 0x30a   :  { %3212 = vmatprep.subr.bf16.mxu1 %v3335_v3 }
 0x30d   :  { %3214 = vmatpush3.bf16.msra.mxu1 %v3469_v51 }
 0x30e   :  { %3215 = vmatprep.subr.bf16.mxu1 %v3335_v3 }
 0x310   :  { %2873 = vmatmul.mubr.f32.vlgmr.msra.gmra.mrb[2].mxu1 %v1216_v53 }
 0x311   :  { %3217 = vmatpush3.bf16.msra.mxu1 %v3519_v27  ;;  %2907 = vmatprep.mubr.msk.f32.mxu1 %vm3336_vm0, %v3337_v8 }
 0x312   :  { %3218 = vmatprep.subr.bf16.mxu1 %v3335_v3 }
 0x315   :  { %3220 = vmatpush3.bf16.msra.mxu1 %v3521_v28 }
 0x316   :  { %3221 = vmatprep.subr.bf16.mxu1 %v3335_v3 }
 0x319   :  { %3223 = vmatpush3.bf16.msra.mxu1 %v3523_v29 }
 0x31a   :  { %3224 = vmatprep.subr.bf16.mxu1 %v3335_v3 }
 0x31d   :  { %3226 = vmatpush3.bf16.msra.mxu1 %v3526_v30 }
 0x31e   :  { %3227 = vmatprep.subr.bf16.mxu1 %v3335_v3 }
 0x321   :  { %3229 = vmatpush3.bf16.msra.mxu1 %v3528_v33 }
 0x322   :  { %3230 = vmatprep.subr.bf16.mxu1 %v3335_v3 }
 0x325   :  { %3232 = vmatpush3.bf16.msra.mxu1 %v3530_v36 }
 0x326   :  { %3233 = vmatprep.subr.bf16.mxu1 %v3335_v3 }
 0x329   :  { %3235 = vmatpush3.bf16.msra.mxu1 %v3532_v37 }
 0x32a   :  { %3236 = vmatprep.subr.bf16.mxu1 %v3335_v3 }
 0x32d   :  { %3238 = vmatpush3.bf16.msra.mxu1 %v3535_v38  ;;  %v2265_v38 = vld [vmem:[%s3897_s3] ss:$0 sm:$0xff] }
 0x32e   :  { %3239 = vmatprep.subr.bf16.mxu1 %v3335_v3 }
 0x330   :  { %2908 = vmatmul.mubr.f32.vlgmr.msra.gmra.mrb[2].mxu1 %v3760_v47 }
 0x331   :  { %3241 = vmatpush3.bf16.msra.mxu1 %v3393_v12  ;;  %2942 = vmatprep.mubr.msk.f32.mxu1 %vm3336_vm0, %v3337_v8 }
 0x332   :  { %3242 = vmatprep.subr.bf16.mxu1 %v3335_v3 }
 0x335   :  { %3244 = vmatpush3.bf16.msra.mxu1 %v3396_v13 }
 0x336   :  { %3245 = vmatprep.subr.bf16.mxu1 %v3335_v3 }
 0x339   :  { %3247 = vmatpush3.bf16.msra.mxu1 %v3406_v18 }
 0x33a   :  { %3248 = vmatprep.subr.bf16.mxu1 %v3335_v3 }
 0x33d   :  { %3250 = vmatpush3.bf16.msra.mxu1 %v3442_v32 }
 0x33e   :  { %3251 = vmatprep.subr.bf16.mxu1 %v3335_v3 }
 0x341   :  { %3253 = vmatpush3.bf16.msra.mxu1 %v3458_v45 }
 0x342   :  { %3254 = vmatprep.subr.bf16.mxu1 %v3335_v3 }
 0x345   :  { %3256 = vmatpush3.bf16.msra.mxu1 %v3465_v49 }
 0x346   :  { %3257 = vmatprep.subr.bf16.mxu1 %v3335_v3 }
 0x349   :  { %3259 = vmatpush3.bf16.msra.mxu1 %v3467_v50 }
 0x34a   :  { %3260 = vmatprep.subr.bf16.mxu1 %v3335_v3 }
 0x34d   :  { %3262 = vmatpush3.bf16.msra.mxu1 %v3469_v51 }
 0x350   :  { %2943 = vmatmul.mubr.f32.vlgmr.msra.gmra.mrb[2].mxu1 %v3760_v47 }
 0x423   :  { %v1770_v12 = vpop.f32.mrb[2].mxu1 }
 0x424   :  { %v1774_v13 = vmul.f32 0.032258064, %v1770_v12  ;;  %v2944_v18 = vpop.f32.mrb[3].mxu1 }
 0x426   :  { %3307 = vrsqrt.f32 %v1774_v13  ;;  %vm1777_vm2 = vcmp.eq.f32.partialorder %v1774_v13, inf  ;;  %v1780_v45 = vand.u32 2147483648, %v1774_v13  ;;  %vm1779_vm3 = vcmp.eq.f32.partialorder %v1774_v13, 0.0 }
 0x430   :  { %v3308_v22 = vpop.eup %3307 }
 0x431   :  { %v1776_v32 = vmul.f32 %v3308_v22, %v1774_v13 }
 0x433   :  { %v1778_v27 = vsel %vm1777_vm2, %v1774_v13, %v1776_v32 }
 0x434   :  { %v1781_v49 = vsel %vm1779_vm3, %v1780_v45, %v1778_v27 }
 0x435   :  { %v1782_v28 = vadd.f32 1e-06, %v1781_v49 }
 0x437   :  { %3309 = vrcp.f32 %v1782_v28 }
 0x441   :  { %v3310_v50 = vpop.eup %3309 }
 0x442   :  { %v1785_v3 = vsel %vm681_vm1, %v3310_v50, 0 }
 0x443   :  { %v1853_v29 = vand.u32 4294901760, %v1785_v3 }
 0x445   :  { %v1854_v51 = vsub.f32 %v1785_v3, %v1853_v29 }
 0x447   :  { %v1855_v30 = vand.u32 4294901760, %v1854_v51 }
 0x449   :  { %v1856_v33 = vsub.f32 %v1854_v51, %v1855_v30 }
 0x44b   :  { %v1857_v36 = vand.u32 4294901760, %v1856_v33 }
 0x44d   :  { %2948 = vmatmul.mubr.f32.vlgmr.msra.gmra.mrb[2].mxu0 %v1857_v36 }
 0x44e   :  { %2951 = vmatpush3.msra.mxu0 %v3715_v11  ;;  %2952 = vmatprep.mubr.msk.f32.mxu0 %vm3336_vm0, %v3337_v8 }
 0x44f   :  { %2955 = vmatprep.subr.mxu0 %v3337_v8 }
 0x455   :  { %2953 = vmatmul.mubr.f32.vlgmr.msra.gmra.mrb[2].mxu0 %v1853_v29 }
 0x456   :  { %2956 = vmatpush3.msra.mxu0 %v3707_v59  ;;  %2957 = vmatprep.mubr.msk.f32.mxu0 %vm3336_vm0, %v3337_v8 }
 0x457   :  { %2960 = vmatprep.subr.mxu0 %v3337_v8 }
 0x45d   :  { %2958 = vmatmul.mubr.f32.vlgmr.msra.gmra.mrb[2].mxu0 %v1854_v51 }
 0x45e   :  { %2961 = vmatpush3.msra.mxu0 %v3700_v52  ;;  %2962 = vmatprep.mubr.msk.f32.mxu0 %vm3336_vm0, %v3337_v8 }
 0x45f   :  { %2965 = vmatprep.subr.mxu0 %v3337_v8 }
 0x465   :  { %2963 = vmatmul.mubr.f32.vlgmr.msra.gmra.mrb[2].mxu0 %v1855_v30 }
 0x466   :  { %2966 = vmatpush3.msra.mxu0 %v3711_v63  ;;  %2967 = vmatprep.mubr.msk.f32.mxu0 %vm3336_vm0, %v3337_v8 }
 0x467   :  { %2970 = vmatprep.subr.mxu0 %v3337_v8 }
 0x46d   :  { %2968 = vmatmul.mubr.f32.vlgmr.msra.gmra.mrb[2].mxu0 %v1853_v29 }
 0x46e   :  { %2971 = vmatpush3.msra.mxu0 %v3700_v52  ;;  %2972 = vmatprep.mubr.msk.f32.mxu0 %vm3336_vm0, %v3337_v8 }
 0x475   :  { %2973 = vmatmul.mubr.f32.vlgmr.msra.gmra.mrb[2].mxu0 %v1853_v29 }
 0x548   :  { %v2229_v37 = vpop.f32.mrb[2].mxu0 }
 0x549   :  { %v2233_v41 = vmul.f32 %v2229_v37, %v3756_v39  ;;  %v2974_v56 = vpop.f32.mrb[3].mxu0 }
 0x54b   :  { %v2241_v16 = vmul.f32 %v2265_v38, %v2233_v41 }
 0x54d   :  { %v2249_v17 = vadd.f32 %v2266_v7, %v2241_v16 }
 0x54f   :  { %2250 = vst [vmem:[#allocation2] sm:$0xf] %v2249_v17 }
 0x550   :  { %3322 = shalt.err (!%p3319_p4)
}
 0x551   :  { %s3323_s9 = scalar_lea.hbm %s3899_s5, 64 }
 0x552   :  { %p3324_p5 = scmp.ne.s32.totalorder %s3899_s5, %s3323_s9  ;;  %p3327_p6 = scmp.lt.u32.totalorder %s3323_s9, %s3899_s5 }
 0x554   :  { %p3329_p7 = pnand %p3327_p6, %p3324_p5 }
 0x556   :  { %3332 = shalt.err (!%p3329_p7)
}
 0x557   :  { %2260 = dma.vmem_to_hbm [thread:$0]  %s2258_s6, 64, %s3899_s5, [#allocation3]  }
 0x558   :  { %3333 = dma.done.wait [#allocation3], 64  }
 0x559   :  { %3334 = vsyncadd [#allocation3], 4294967232 }
 0x55a   :  { %2264 = vsyncpa [#allocation3], 1 }

// kernel: tpu_custom_call.1
= control target key start
LH: loop header
LB: loop body
LE: loop exit
PB: predicated region body
PF: predicated region fallthrough
CT: control target
= control target key end

     0   :  { %8 = vsyncpa [#allocation3], 0  ;;  %s238_s0 = inlined_call_operand.hbm [shape: f32[16,32], index: 0, kind: input, shape index: {}]   ;;  %s239_s1 = inlined_call_operand.vmem [shape: f32[1,32], index: 1, kind: input, shape index: {}]   ;;  %s240_s2 = inlined_call_operand.vmem [shape: f32[1,32], index: 2, kind: input, shape index: {}]   ;;  %s241_s3 = inlined_call_operand.hbm [shape: f32[16,32], index: 3, kind: output, shape index: {}]  }
   0x1   :  { %9 = vsyncpa [#allocation4], 0  ;;  %s172_s12 = smov [#allocation2]   ;;  %s124_s16 = scalar_lea.hbm %s238_s0, 256 }
   0x2   :  { %s15_s13 = sshll.u32 %s172_s12, 4  ;;  %p125_p0 = scmp.ne.s32.totalorder %s238_s0, %s124_s16  ;;  %s16_s13 = int_to_ptr.vmem [resolvable:$true] %s15_s13 }
   0x3   :  { %p128_p1 = scmp.lt.u32.totalorder %s124_s16, %s238_s0 }
   0x5   :  { %p130_p2 = pnand %p128_p1, %p125_p0 }
   0x7   :  { %133 = shalt.err (!%p130_p2)
}
   0x8   :  { %s134_s21 = scalar_lea.vmem %s16_s13, 256  ;;  %p139_p4 = scmp.lt.s32.totalorder %s16_s13, %s16_s13 }
   0x9   :  { %p135_p3 = scmp.ne.s32.totalorder %s16_s13, %s134_s21  ;;  %p140_p5 = scmp.lt.s32.totalorder %s134_s21, %s134_s21 }
   0xb   :  { %p141_p6 = por %p140_p5, %p139_p4 }
   0xd   :  { %p142_p7 = pnand %p141_p6, %p135_p3 }
   0xf   :  { %145 = shalt.err (!%p142_p7)
}
  0x10   :  { %s173_s22 = smov 128   ;;  %s174_s23 = smov 8  }
  0x11   :  { %21 = dma.hbm_to_vmem [thread:$0]  %s238_s0, 256, %s16_s13, [#allocation3], %s173_s22, %s173_s22, %s174_s23  }
  0x12   :  { %168 = dma.done.wait [#allocation3], 256  }
  0x13   :  { %169 = vsyncadd [#allocation3], 4294967040  ;;  %vm31_vm0 = vcmask 261120   ;;  %v29_v0 = vld [vmem:[#allocation2] sm:$0xff]  ;;  %v30_v1 = vld [vmem:[#allocation2 + $0x8] sm:$0xff]  ;;  %s175_s29 = smov [#allocation5]  }
  0x14   :  { %v32_v2 = vsel %vm31_vm0, %v29_v0, 0.0  ;;  %v35_v3 = vsel %vm31_vm0, %v30_v1, 0.0  ;;  %v110_v31 = vld [vmem:[%s239_s1] ss:$0 sm:$0xff]  ;;  %s98_s30 = sshll.u32 %s175_s29, 4  ;;  %s99_s30 = int_to_ptr.vmem [resolvable:$true] %s98_s30 }
  0x15   :  { %33 = vadd.xlane.f32.xlu0 %v32_v2  ;;  %v111_v33 = vld [vmem:[%s240_s2] ss:$0 sm:$0xff]  ;;  %s146_s4 = scalar_lea.vmem %s99_s30, 256  ;;  %p151_p9 = scmp.lt.s32.totalorder %s99_s30, %s99_s30 }
  0x16   :  { %p147_p8 = scmp.ne.s32.totalorder %s99_s30, %s146_s4  ;;  %p152_p10 = scmp.lt.s32.totalorder %s146_s4, %s146_s4 }
  0x18   :  { %p153_p11 = por %p152_p10, %p151_p9 }
  0x19   :  { %36 = vadd.xlane.f32.xlu0 %v35_v3 }
  0x1a   :  { %p154_p12 = pnand %p153_p11, %p147_p8 }
  0xa2   :  { %v34_v4 = vpop.xlane.xlu0 %33 }
  0xa3   :  { %v39_v5 = vmul.f32 0.03125, %v34_v4 }
  0xa5   :  { %v41_v6 = vsub.f32 %v29_v0, %v39_v5 }
  0xa6   :  { %v37_v7 = vpop.xlane.xlu0 %36 }
  0xa7   :  { %v40_v8 = vmul.f32 0.03125, %v37_v7  ;;  %v43_v9 = vmul.f32 %v41_v6, %v41_v6 }
  0xa9   :  { %v42_v10 = vsub.f32 %v30_v1, %v40_v8  ;;  %v45_v11 = vsel %vm31_vm0, %v43_v9, 0.0 }
  0xaa   :  { %46 = vadd.xlane.f32.xlu1 %v45_v11 }
  0xab   :  { %v44_v12 = vmul.f32 %v42_v10, %v42_v10 }
  0xad   :  { %v48_v13 = vsel %vm31_vm0, %v44_v12, 0.0 }
  0xae   :  { %49 = vadd.xlane.f32.xlu1 %v48_v13 }
 0x137   :  { %v47_v14 = vpop.xlane.xlu1 %46 }
 0x138   :  { %v51_v15 = vmul.f32 0.032258064, %v47_v14 }
 0x13a   :  { %116 = vrsqrt.f32 %v51_v15  ;;  %vm55_vm1 = vcmp.eq.f32.partialorder %v51_v15, inf  ;;  %v58_v20 = vand.u32 2147483648, %v51_v15  ;;  %vm57_vm2 = vcmp.eq.f32.partialorder %v51_v15, 0.0 }
 0x13b   :  { %v50_v16 = vpop.xlane.xlu1 %49 }
 0x13c   :  { %v52_v17 = vmul.f32 0.032258064, %v50_v16 }
 0x13e   :  { %118 = vrsqrt.f32 %v52_v17  ;;  %vm62_vm3 = vcmp.eq.f32.partialorder %v52_v17, inf  ;;  %v65_v26 = vand.u32 2147483648, %v52_v17  ;;  %vm64_vm4 = vcmp.eq.f32.partialorder %v52_v17, 0.0 }
 0x144   :  { %v117_v18 = vpop.eup %116 }
 0x145   :  { %v54_v19 = vmul.f32 %v117_v18, %v51_v15 }
 0x147   :  { %v56_v21 = vsel %vm55_vm1, %v51_v15, %v54_v19 }
 0x148   :  { %v119_v22 = vpop.eup %118  ;;  %v59_v23 = vsel %vm57_vm2, %v58_v20, %v56_v21 }
 0x149   :  { %v67_v24 = vadd.f32 1e-06, %v59_v23  ;;  %v61_v25 = vmul.f32 %v119_v22, %v52_v17 }
 0x14b   :  { %120 = vrcp.f32 %v67_v24  ;;  %v63_v27 = vsel %vm62_vm3, %v52_v17, %v61_v25 }
 0x14c   :  { %v66_v28 = vsel %vm64_vm4, %v65_v26, %v63_v27 }
 0x14d   :  { %v68_v29 = vadd.f32 1e-06, %v66_v28 }
 0x14f   :  { %122 = vrcp.f32 %v68_v29 }
 0x155   :  { %v121_v30 = vpop.eup %120 }
 0x156   :  { %v71_v32 = vmul.f32 %v121_v30, %v41_v6 }
 0x158   :  { %v80_v34 = vmul.f32 %v110_v31, %v71_v32 }
 0x159   :  { %v123_v35 = vpop.eup %122 }
 0x15a   :  { %v72_v36 = vmul.f32 %v123_v35, %v42_v10  ;;  %v89_v37 = vadd.f32 %v111_v33, %v80_v34 }
 0x15c   :  { %v81_v38 = vmul.f32 %v110_v31, %v72_v36  ;;  %91 = vst.msk [vmem:[#allocation5] sm:$0xff] %vm31_vm0, %v89_v37 }
 0x15e   :  { %v90_v39 = vadd.f32 %v111_v33, %v81_v38 }
 0x160   :  { %92 = vst.msk [vmem:[#allocation5 + $0x8] sm:$0xff] %vm31_vm0, %v90_v39 }
 0x161   :  { %157 = shalt.err (!%p154_p12)
}
 0x162   :  { %s158_s5 = scalar_lea.hbm %s241_s3, 256 }
 0x163   :  { %p159_p13 = scmp.ne.s32.totalorder %s241_s3, %s158_s5  ;;  %p162_p0 = scmp.lt.u32.totalorder %s158_s5, %s241_s3 }
 0x165   :  { %p164_p1 = pnand %p162_p0, %p159_p13 }
 0x167   :  { %167 = shalt.err (!%p164_p1)
}
 0x168   :  { %104 = dma.vmem_to_hbm [thread:$0]  %s99_s30, 256, %s241_s3, [#allocation4], %s173_s22, %s173_s22, %s174_s23  }
 0x169   :  { %170 = dma.done.wait [#allocation4], 256  }
 0x16a   :  { %171 = vsyncadd [#allocation4], 4294967040 }
 0x16b   :  { %108 = vsyncpa [#allocation3], 1 }
 0x16c   :  { %109 = vsyncpa [#allocation4], 1 }

</bundles_post_ra>
